<compile_context>
chip_gen: v6e
topology: v6e:2x2x1
jax: 0.10.0
libtpu: 0.0.40
codegen_flags: <defaults>
</compile_context>

<pallas_src>
import functools
import math

import jax
import jax.numpy as jnp
from jax.experimental import pallas as pl
from jax.experimental.pallas import tpu as pltpu

LAYER_DIMS = [(4, 64), (64, 120), (120, 120), (120, 84), (84, 5)]
NUM_LAYERS = len(LAYER_DIMS)
IN_DIM = LAYER_DIMS[0][0]
OUT_DIM = LAYER_DIMS[-1][1]
PAD = 128      # lane-dense padding for the hidden feature dims
IN_PAD = 8     # input features padded to one f32 sublane (4 real + 4 zero)
OUT_PAD = 8    # output lanes kept narrow (5 real + 3 zero)


def _round_up(n, m):
    return -(-n // m) * m


def mlp_kernel(x_ref, w0_ref, w_ref, b_ref, o_ref):
    """One batch tile through all 5 layers (static unroll).

    x_ref : (tb, 8)        f32   input rows (features 0..3 real, 4..7 zero)
    w0_ref: (8, 128)       f32   fc1 weight (rows 4..7 and cols 64..127 zero)
    w_ref : (4, 128, 128)  bf16  fc2..out weights, zero-padded to 128x128
    b_ref : (5, 1, 128)    f32   all biases, zero-padded to 128 lanes
    o_ref : (tb, 8)        f32   output rows (cols 0..4 real)
    """
    # Layer 0: true K=4, padded to one f32 sublane.  One trivial f32 MXU push.
    h = jnp.dot(x_ref[...], w0_ref[...], preferred_element_type=jnp.float32)
    h = jnp.maximum(h + b_ref[0], 0.0)
    # Layers 1..4: bf16 operands on the MXU, f32 accumulation / bias / ReLU.
    for i in range(1, NUM_LAYERS):
        h = jnp.dot(h.astype(jnp.bfloat16), w_ref[i - 1],
                    preferred_element_type=jnp.float32) + b_ref[i]
        if i < NUM_LAYERS - 1:
            h = jnp.maximum(h, 0.0)
    o_ref[...] = h[:, :OUT_PAD].astype(o_ref.dtype)


def pack_params(params):
    """Pack the 5 (W, b) pairs into lane-dense slabs. Call ONCE at init."""
    w0, b0 = params[0]
    w0_pad = jnp.zeros((IN_PAD, PAD), jnp.float32)
    w0_pad = w0_pad.at[: w0.shape[0], : w0.shape[1]].set(w0)

    w_slab = jnp.zeros((NUM_LAYERS - 1, PAD, PAD), jnp.bfloat16)
    b_slab = jnp.zeros((NUM_LAYERS, 1, PAD), jnp.float32)
    b_slab = b_slab.at[0, 0, : b0.shape[-1]].set(b0.reshape(-1))
    for i, (w, b) in enumerate(params[1:], start=1):
        di, do = w.shape
        w_slab = w_slab.at[i - 1, :di, :do].set(w.astype(jnp.bfloat16))
        b_slab = b_slab.at[i, 0, :do].set(b.reshape(-1))
    return w0_pad, w_slab, b_slab


@functools.partial(jax.jit, static_argnames=("block_batch",))
def neural_network_forward(x, w0_pad, w_slab, b_slab, *, block_batch=2048):
    """x: (batch, 4) f32.  Packed params from pack_params().  Returns (batch, 5)."""
    batch, in_dim = x.shape

    # ---- batch tile: large by default; keep >=2 grid steps when possible so
    # ---- both v7x TensorCores get work; sublane-align the tile. -------------
    tb = _round_up(block_batch, 8)
    if batch < 2 * tb:
        tb = max(8, _round_up((batch + 1) // 2, 8))
    batch_padded = _round_up(batch, tb)
    grid = (batch_padded // tb,)

    # ---- narrow, sublane-aligned input (no 128-lane padded HBM pass) --------
    x_pad = jnp.pad(x.astype(jnp.float32),
                    ((0, batch_padded - batch), (0, IN_PAD - in_dim)))

    out_padded = pl.pallas_call(
        mlp_kernel,
        out_shape=jax.ShapeDtypeStruct((batch_padded, OUT_PAD), jnp.float32),
        grid_spec=pltpu.PrefetchScalarGridSpec(
            num_scalar_prefetch=0,
            grid=grid,
            in_specs=[
                pl.BlockSpec((tb, IN_PAD), lambda i: (i, 0)),                   # x rows
                pl.BlockSpec((IN_PAD, PAD), lambda i: (0, 0)),                  # fc1 W (resident)
                pl.BlockSpec((NUM_LAYERS - 1, PAD, PAD), lambda i: (0, 0, 0)),  # fc2..out W (resident)
                pl.BlockSpec((NUM_LAYERS, 1, PAD), lambda i: (0, 0, 0)),        # biases (resident)
            ],
            out_specs=pl.BlockSpec((tb, OUT_PAD), lambda i: (i, 0)),
        ),
        compiler_params=pltpu.CompilerParams(
            dimension_semantics=("parallel",),   # batch tiles shard across TCs (v7x)
        ),
    )(x_pad, w0_pad, w_slab, b_slab)

    # Slice away batch padding and the 3 zero output lanes.
    return out_padded[:batch, :OUT_DIM]


def init_linear(key, in_features, out_features):
    """Deterministic init mimicking PyTorch nn.Linear default (U(+/- 1/sqrt(in)))."""
    kw, kb = jax.random.split(key)
    bound = 1.0 / math.sqrt(in_features)
    w = jax.random.uniform(kw, (in_features, out_features), jnp.float32, -bound, bound)
    b = jax.random.uniform(kb, (1, out_features), jnp.float32, -bound, bound)
    return w, b


def reference_forward(x, params):
    """Pure-JAX reference matching the kernel's mixed precision:
    layer 0 in f32, layers 1..4 with bf16 operands and f32 accumulation."""
    h = x
    for i, (w, b) in enumerate(params):
        if i == 0:
            h = jnp.dot(h, w, preferred_element_type=jnp.float32) + b
        else:
            h = jnp.dot(h.astype(jnp.bfloat16), w.astype(jnp.bfloat16),
                        preferred_element_type=jnp.float32) + b
        if i < len(params) - 1:
            h = jnp.maximum(h, 0.0)
    return h


if __name__ == "__main__":
    key = jax.random.PRNGKey(0)
    k_x, k1, k2, k3, k4, k5 = jax.random.split(key, 6)

    # Small batch of weather-feature rows: (batch=8, features=4)
    x = jax.random.normal(k_x, (8, IN_DIM), jnp.float32)

    params = [init_linear(k, i, o) for k, (i, o) in zip([k1, k2, k3, k4, k5], LAYER_DIMS)]
    packed = pack_params(params)   # packed/cast once, reused across forward calls

    out = neural_network_forward(x, *packed)
    out = jax.block_until_ready(out)

    ref = reference_forward(x, params)
    assert out.shape == (8, OUT_DIM), out.shape
    # bf16 matmul operands in layers 1..4 are a deliberate perf choice; the
    # reference above uses the same precision, so this tolerance is comfortable.
    assert jnp.allclose(out, ref, atol=2e-2, rtol=2e-2), "mismatch vs reference"

    print("KERNEL_OK")
</pallas_src>

<mosaic_0001>
module attributes {stable_mosaic.version = 11 : i64} {
  func.func @mlp_kernel(%arg0: i32, %arg1: memref<8x8xf32, #tpu.memory_space<vmem>>, %arg2: memref<8x128xf32, #tpu.memory_space<vmem>>, %arg3: memref<4x128x128xbf16, #tpu.memory_space<vmem>>, %arg4: memref<5x1x128xf32, #tpu.memory_space<vmem>>, %arg5: memref<8x8xf32, #tpu.memory_space<vmem>>) attributes {dimension_semantics = [#tpu.dimension_semantics<parallel>], iteration_bounds = array<i64: 1>, scalar_prefetch = 0 : i64, scratch_operands = 0 : i64, tpu.core_type = #tpu.core_type<tc>, window_params = [{transform_indices = @transform_0, window_bounds = array<i64: 8, 8>}, {pipeline_mode = #tpu.pipeline_mode<synchronous>, transform_indices = @transform_1, window_bounds = array<i64: 8, 128>}, {pipeline_mode = #tpu.pipeline_mode<synchronous>, transform_indices = @transform_2, window_bounds = array<i64: 4, 128, 128>}, {pipeline_mode = #tpu.pipeline_mode<synchronous>, transform_indices = @transform_3, window_bounds = array<i64: 5, 1, 128>}, {transform_indices = @transform_4, window_bounds = array<i64: 8, 8>}]} {
    %c0 = arith.constant 0 : index
    %c0_0 = arith.constant 0 : index
    %0 = vector.load %arg1[%c0, %c0_0] : memref<8x8xf32, #tpu.memory_space<vmem>>, vector<8x8xf32>
    %c0_1 = arith.constant 0 : index
    %c0_2 = arith.constant 0 : index
    %1 = vector.load %arg2[%c0_1, %c0_2] : memref<8x128xf32, #tpu.memory_space<vmem>>, vector<8x128xf32>
    %cst = arith.constant dense<0.000000e+00> : vector<8x128xf32>
    %2 = tpu.matmul %0, %1, %cst {dimension_numbers = #tpu.dot_dimension_numbers<[1], [0], [0], [1], [0, 0, 1, 1], [], []>} : vector<8x8xf32>, vector<8x128xf32>, vector<8x128xf32> -> vector<8x128xf32>
    %c0_3 = arith.constant 0 : index
    %c0_4 = arith.constant 0 : index
    %c0_5 = arith.constant 0 : index
    %3 = vector.load %arg4[%c0_3, %c0_4, %c0_5] : memref<5x1x128xf32, #tpu.memory_space<vmem>>, vector<1x1x128xf32>
    %4 = vector.shape_cast %3 : vector<1x1x128xf32> to vector<1x128xf32>
    %5 = vector.broadcast %4 : vector<1x128xf32> to vector<8x128xf32>
    %6 = arith.addf %2, %5 : vector<8x128xf32>
    %cst_6 = arith.constant 0.000000e+00 : f32
    %7 = vector.broadcast %cst_6 : f32 to vector<8x128xf32>
    %8 = arith.maximumf %6, %7 : vector<8x128xf32>
    %9 = arith.truncf %8 : vector<8x128xf32> to vector<8x128xbf16>
    %c0_7 = arith.constant 0 : index
    %c0_8 = arith.constant 0 : index
    %c0_9 = arith.constant 0 : index
    %10 = vector.load %arg3[%c0_7, %c0_8, %c0_9] : memref<4x128x128xbf16, #tpu.memory_space<vmem>>, vector<1x128x128xbf16>
    %11 = vector.shape_cast %10 : vector<1x128x128xbf16> to vector<128x128xbf16>
    %cst_10 = arith.constant dense<0.000000e+00> : vector<8x128xf32>
    %12 = tpu.matmul %9, %11, %cst_10 {dimension_numbers = #tpu.dot_dimension_numbers<[1], [0], [0], [1], [0, 0, 1, 1], [], []>} : vector<8x128xbf16>, vector<128x128xbf16>, vector<8x128xf32> -> vector<8x128xf32>
    %c1 = arith.constant 1 : index
    %c0_11 = arith.constant 0 : index
    %c0_12 = arith.constant 0 : index
    %13 = vector.load %arg4[%c1, %c0_11, %c0_12] : memref<5x1x128xf32, #tpu.memory_space<vmem>>, vector<1x1x128xf32>
    %14 = vector.shape_cast %13 : vector<1x1x128xf32> to vector<1x128xf32>
    %15 = vector.broadcast %14 : vector<1x128xf32> to vector<8x128xf32>
    %16 = arith.addf %12, %15 : vector<8x128xf32>
    %cst_13 = arith.constant 0.000000e+00 : f32
    %17 = vector.broadcast %cst_13 : f32 to vector<8x128xf32>
    %18 = arith.maximumf %16, %17 : vector<8x128xf32>
    %19 = arith.truncf %18 : vector<8x128xf32> to vector<8x128xbf16>
    %c1_14 = arith.constant 1 : index
    %c0_15 = arith.constant 0 : index
    %c0_16 = arith.constant 0 : index
    %20 = vector.load %arg3[%c1_14, %c0_15, %c0_16] : memref<4x128x128xbf16, #tpu.memory_space<vmem>>, vector<1x128x128xbf16>
    %21 = vector.shape_cast %20 : vector<1x128x128xbf16> to vector<128x128xbf16>
    %cst_17 = arith.constant dense<0.000000e+00> : vector<8x128xf32>
    %22 = tpu.matmul %19, %21, %cst_17 {dimension_numbers = #tpu.dot_dimension_numbers<[1], [0], [0], [1], [0, 0, 1, 1], [], []>} : vector<8x128xbf16>, vector<128x128xbf16>, vector<8x128xf32> -> vector<8x128xf32>
    %c2 = arith.constant 2 : index
    %c0_18 = arith.constant 0 : index
    %c0_19 = arith.constant 0 : index
    %23 = vector.load %arg4[%c2, %c0_18, %c0_19] : memref<5x1x128xf32, #tpu.memory_space<vmem>>, vector<1x1x128xf32>
    %24 = vector.shape_cast %23 : vector<1x1x128xf32> to vector<1x128xf32>
    %25 = vector.broadcast %24 : vector<1x128xf32> to vector<8x128xf32>
    %26 = arith.addf %22, %25 : vector<8x128xf32>
    %cst_20 = arith.constant 0.000000e+00 : f32
    %27 = vector.broadcast %cst_20 : f32 to vector<8x128xf32>
    %28 = arith.maximumf %26, %27 : vector<8x128xf32>
    %29 = arith.truncf %28 : vector<8x128xf32> to vector<8x128xbf16>
    %c2_21 = arith.constant 2 : index
    %c0_22 = arith.constant 0 : index
    %c0_23 = arith.constant 0 : index
    %30 = vector.load %arg3[%c2_21, %c0_22, %c0_23] : memref<4x128x128xbf16, #tpu.memory_space<vmem>>, vector<1x128x128xbf16>
    %31 = vector.shape_cast %30 : vector<1x128x128xbf16> to vector<128x128xbf16>
    %cst_24 = arith.constant dense<0.000000e+00> : vector<8x128xf32>
    %32 = tpu.matmul %29, %31, %cst_24 {dimension_numbers = #tpu.dot_dimension_numbers<[1], [0], [0], [1], [0, 0, 1, 1], [], []>} : vector<8x128xbf16>, vector<128x128xbf16>, vector<8x128xf32> -> vector<8x128xf32>
    %c3 = arith.constant 3 : index
    %c0_25 = arith.constant 0 : index
    %c0_26 = arith.constant 0 : index
    %33 = vector.load %arg4[%c3, %c0_25, %c0_26] : memref<5x1x128xf32, #tpu.memory_space<vmem>>, vector<1x1x128xf32>
    %34 = vector.shape_cast %33 : vector<1x1x128xf32> to vector<1x128xf32>
    %35 = vector.broadcast %34 : vector<1x128xf32> to vector<8x128xf32>
    %36 = arith.addf %32, %35 : vector<8x128xf32>
    %cst_27 = arith.constant 0.000000e+00 : f32
    %37 = vector.broadcast %cst_27 : f32 to vector<8x128xf32>
    %38 = arith.maximumf %36, %37 : vector<8x128xf32>
    %39 = arith.truncf %38 : vector<8x128xf32> to vector<8x128xbf16>
    %c3_28 = arith.constant 3 : index
    %c0_29 = arith.constant 0 : index
    %c0_30 = arith.constant 0 : index
    %40 = vector.load %arg3[%c3_28, %c0_29, %c0_30] : memref<4x128x128xbf16, #tpu.memory_space<vmem>>, vector<1x128x128xbf16>
    %41 = vector.shape_cast %40 : vector<1x128x128xbf16> to vector<128x128xbf16>
    %cst_31 = arith.constant dense<0.000000e+00> : vector<8x128xf32>
    %42 = tpu.matmul %39, %41, %cst_31 {dimension_numbers = #tpu.dot_dimension_numbers<[1], [0], [0], [1], [0, 0, 1, 1], [], []>} : vector<8x128xbf16>, vector<128x128xbf16>, vector<8x128xf32> -> vector<8x128xf32>
    %c4 = arith.constant 4 : index
    %c0_32 = arith.constant 0 : index
    %c0_33 = arith.constant 0 : index
    %43 = vector.load %arg4[%c4, %c0_32, %c0_33] : memref<5x1x128xf32, #tpu.memory_space<vmem>>, vector<1x1x128xf32>
    %44 = vector.shape_cast %43 : vector<1x1x128xf32> to vector<1x128xf32>
    %45 = vector.broadcast %44 : vector<1x128xf32> to vector<8x128xf32>
    %46 = arith.addf %42, %45 : vector<8x128xf32>
    %47 = vector.extract_strided_slice %46 {offsets = [0, 0], sizes = [8, 8], strides = [1, 1]} : vector<8x128xf32> to vector<8x8xf32>
    %c0_34 = arith.constant 0 : index
    %c0_35 = arith.constant 0 : index
    %48 = vector.load %arg5[%c0_34, %c0_35] : memref<8x8xf32, #tpu.memory_space<vmem>>, vector<8x8xf32>
    tpu.vector_store %arg5[%c0_34, %c0_35], %47 {strides = array<i32>} : memref<8x8xf32, #tpu.memory_space<vmem>>, vector<8x8xf32>,
    return
  }
  func.func @transform_0(%arg0: i32) -> (i32, i32) {
    %c0_i32 = arith.constant 0 : i32
    %c0_i32_0 = arith.constant 0 : i32
    return %arg0, %c0_i32 : i32, i32
  }
  func.func @transform_1(%arg0: i32) -> (i32, i32) {
    %c0_i32 = arith.constant 0 : i32
    %c0_i32_0 = arith.constant 0 : i32
    %c0_i32_1 = arith.constant 0 : i32
    return %c0_i32, %c0_i32_0 : i32, i32
  }
  func.func @transform_2(%arg0: i32) -> (i32, i32, i32) {
    %c0_i32 = arith.constant 0 : i32
    %c0_i32_0 = arith.constant 0 : i32
    %c0_i32_1 = arith.constant 0 : i32
    %c0_i32_2 = arith.constant 0 : i32
    return %c0_i32, %c0_i32_0, %c0_i32_1 : i32, i32, i32
  }
  func.func @transform_3(%arg0: i32) -> (i32, i32, i32) {
    %c0_i32 = arith.constant 0 : i32
    %c0_i32_0 = arith.constant 0 : i32
    %c0_i32_1 = arith.constant 0 : i32
    %c0_i32_2 = arith.constant 0 : i32
    return %c0_i32, %c0_i32_0, %c0_i32_1 : i32, i32, i32
  }
  func.func @transform_4(%arg0: i32) -> (i32, i32) {
    %c0_i32 = arith.constant 0 : i32
    %c0_i32_0 = arith.constant 0 : i32
    return %arg0, %c0_i32 : i32, i32
  }
}

</mosaic_0001>

<bundles_post_ra>
// kernel: neural_network_forward.1
= control target key start
LH: loop header
LB: loop body
LE: loop exit
PB: predicated region body
PF: predicated region fallthrough
CT: control target
= control target key end

     0   :  { %9 = vsyncpa [#allocation3], 0  ;;  %s941_s0 = inlined_call_operand.vmem [shape: f32[8,8], index: 0, kind: input, shape index: {}]   ;;  %s942_s1 = inlined_call_operand.vmem [shape: f32[8,128], index: 1, kind: input, shape index: {}]   ;;  %s943_s2 = inlined_call_operand.hbm [shape: bf16[4,128,128], index: 2, kind: input, shape index: {}]   ;;  %s944_s3 = inlined_call_operand.vmem [shape: f32[5,1,128], index: 3, kind: input, shape index: {}]   ;;  %s945_s4 = inlined_call_operand.hbm [shape: f32[8,8], index: 4, kind: output, shape index: {}]  }
   0x1   :  { %10 = vsyncpa [#allocation4], 0  ;;  %s838_s15 = smov [#allocation2]  }
   0x2   :  { %s20_s16 = sshll.u32 %s838_s15, 4  ;;  %s21_s16 = int_to_ptr.vmem [resolvable:$true] %s20_s16 }
   0x3   :  { %s802_s17 = scalar_lea.vmem %s21_s16, 4096  ;;  %p807_p1 = scmp.lt.s32.totalorder %s21_s16, %s21_s16 }
   0x4   :  { %p803_p0 = scmp.ne.s32.totalorder %s21_s16, %s802_s17  ;;  %p808_p2 = scmp.lt.s32.totalorder %s802_s17, %s802_s17 }
   0x6   :  { %p809_p3 = por %p808_p2, %p807_p1 }
   0x8   :  { %p810_p4 = pnand %p809_p3, %p803_p0 }
   0xa   :  { %813 = shalt.err (!%p810_p4)
}
   0xb   :  { %s839_s18 = smov 64   ;;  %s840_s19 = smov 4  }
   0xc   :  { %26 = dma.hbm_to_vmem [thread:$0]  %s943_s2, 4096, %s21_s16, [#allocation3], %s839_s18, %s839_s18, %s840_s19  }
   0xd   :  { %834 = dma.done.wait [#allocation3], 4096  }
   0xe   :  { %835 = vsyncadd [#allocation3], 4294963200  ;;  %v841_v0 = vmov 0.0   ;;  %vm842_vm0 = vmmov 0   ;;  %vm42_vm1 = vcmask 64512   ;;  %v34_v1 = vld [vmem:[%s942_s1] sm:$0xff] }
   0xf   :  { %671 = vmatprep.subr.mxu0 %v841_v0  ;;  %673 = vmatprep.mubr.msk.f32.mxu0 %vm842_vm0, %v841_v0  ;;  %v33_v2 = vld [vmem:[%s941_s0] sm:$0xff]  ;;  %v762_v3 = vld [vmem:[#allocation2 + $0x38] sm:$0xff]   ;;  %v763_v4 = vld [vmem:[#allocation2 + $0x30] sm:$0xff]   ;;  %s843_s7 = smov [#allocation5]  }
  0x10   :  { %676 = vmatprep.subr.bf16.mxu1 %v841_v0  ;;  %692 = vmatprep.mubr.msk.bf16.mxu1 %vm842_vm0, %v841_v0  ;;  %v764_v5 = vld [vmem:[#allocation2 + $0x28] sm:$0xff]   ;;  %v765_v6 = vld [vmem:[#allocation2 + $0x20] sm:$0xff]   ;;  %v766_v7 = vld [vmem:[#allocation2 + $0x18] sm:$0xff]   ;;  %s582_s8 = sshll.u32 %s843_s7, 4  ;;  %s583_s8 = int_to_ptr.vmem [resolvable:$true] %s582_s8 }
  0x11   :  { %672 = vmatpush3.msra.mxu0 %v34_v1  ;;  %677 = vmatpush3.bf16.msra.mxu1 %v762_v3  ;;  %v767_v8 = vld [vmem:[#allocation2 + $0x10] sm:$0xff]   ;;  %v768_v9 = vld [vmem:[#allocation2 + $0x8] sm:$0xff]   ;;  %v769_v10 = vld [vmem:[#allocation2] sm:$0xff]   ;;  %s814_s9 = scalar_lea.vmem %s583_s8, 128  ;;  %p819_p6 = scmp.lt.s32.totalorder %s583_s8, %s583_s8 }
  0x12   :  { %674 = vmatmul.mubr.msk.f32.vlgmr.msra.gmra.mxu0 %vm42_vm1, %v33_v2  ;;  %696 = vmatprep.subr.bf16.mxu0 %v841_v0  ;;  %v770_v11 = vld [vmem:[#allocation2 + $0x78] sm:$0xff]   ;;  %v771_v12 = vld [vmem:[#allocation2 + $0x70] sm:$0xff]   ;;  %v772_v13 = vld [vmem:[#allocation2 + $0x68] sm:$0xff]   ;;  %p815_p5 = scmp.ne.s32.totalorder %s583_s8, %s814_s9  ;;  %p820_p7 = scmp.lt.s32.totalorder %s814_s9, %s814_s9 }
  0x13   :  { %712 = vmatprep.mubr.msk.bf16.mxu0 %vm842_vm0, %v841_v0  ;;  %678 = vmatprep.subr.bf16.mxu1 %v841_v0  ;;  %v773_v14 = vld [vmem:[#allocation2 + $0x60] sm:$0xff]   ;;  %v774_v15 = vld [vmem:[#allocation2 + $0x58] sm:$0xff]   ;;  %v775_v16 = vld [vmem:[#allocation2 + $0x50] sm:$0xff]  }
  0x14   :  { %697 = vmatpush3.bf16.msra.mxu0 %v770_v11  ;;  %v591_v17 = vld [vmem:[%s944_s3] ss:$0 sm:$0xff]  ;;  %v776_v23 = vld [vmem:[#allocation2 + $0x48] sm:$0xff]   ;;  %v778_v25 = vld [vmem:[#allocation2 + $0xb8] sm:$0xff]   ;;  %p821_p8 = por %p820_p7, %p819_p6 }
  0x15   :  { %679 = vmatpush3.bf16.msra.mxu1 %v763_v4  ;;  %698 = vmatprep.subr.bf16.mxu0 %v841_v0  ;;  %v777_v24 = vld [vmem:[#allocation2 + $0x40] sm:$0xff]   ;;  %v779_v26 = vld [vmem:[#allocation2 + $0xb0] sm:$0xff]   ;;  %v780_v27 = vld [vmem:[#allocation2 + $0xa8] sm:$0xff]  }
  0x16   :  { %680 = vmatprep.subr.bf16.mxu1 %v841_v0  ;;  %v781_v28 = vld [vmem:[#allocation2 + $0xa0] sm:$0xff]   ;;  %v782_v29 = vld [vmem:[#allocation2 + $0x98] sm:$0xff]   ;;  %v783_v30 = vld [vmem:[#allocation2 + $0x90] sm:$0xff]   ;;  %p822_p9 = pnand %p821_p8, %p815_p5 }
  0x17   :  { %v594_v31 = vld [vmem:[%s944_s3 + $0x1] ss:$0 sm:$0xff]  ;;  %v784_v39 = vld [vmem:[#allocation2 + $0x88] sm:$0xff]   ;;  %v786_v41 = vld [vmem:[#allocation2 + $0xf8] sm:$0xff]  }
  0x18   :  { %699 = vmatpush3.bf16.msra.mxu0 %v771_v12  ;;  %v785_v40 = vld [vmem:[#allocation2 + $0x80] sm:$0xff]   ;;  %v787_v42 = vld [vmem:[#allocation2 + $0xf0] sm:$0xff]   ;;  %v788_v43 = vld [vmem:[#allocation2 + $0xe8] sm:$0xff]  }
  0x19   :  { %681 = vmatpush3.bf16.msra.mxu1 %v764_v5  ;;  %700 = vmatprep.subr.bf16.mxu0 %v841_v0  ;;  %v789_v44 = vld [vmem:[#allocation2 + $0xe0] sm:$0xff]   ;;  %v790_v45 = vld [vmem:[#allocation2 + $0xd8] sm:$0xff]   ;;  %v791_v46 = vld [vmem:[#allocation2 + $0xd0] sm:$0xff]  }
  0x1a   :  { %682 = vmatprep.subr.bf16.mxu1 %v841_v0  ;;  %v604_v47 = vld [vmem:[%s944_s3 + $0x2] ss:$0 sm:$0xff]  ;;  %v792_v55 = vld [vmem:[#allocation2 + $0xc8] sm:$0xff]   ;;  %v614_v57 = vld [vmem:[%s944_s3 + $0x3] ss:$0 sm:$0xff] }
  0x1b   :  { %v793_v56 = vld [vmem:[#allocation2 + $0xc0] sm:$0xff]  }
  0x1c   :  { %701 = vmatpush3.bf16.msra.mxu0 %v772_v13  ;;  %v624_v2 = vld [vmem:[%s944_s3 + $0x4] ss:$0 sm:$0xff] }
  0x1d   :  { %683 = vmatpush3.bf16.msra.mxu1 %v765_v6  ;;  %702 = vmatprep.subr.bf16.mxu0 %v841_v0 }
  0x1e   :  { %684 = vmatprep.subr.bf16.mxu1 %v841_v0 }
  0x20   :  { %703 = vmatpush3.bf16.msra.mxu0 %v773_v14 }
  0x21   :  { %685 = vmatpush3.bf16.msra.mxu1 %v766_v7  ;;  %704 = vmatprep.subr.bf16.mxu0 %v841_v0 }
  0x22   :  { %686 = vmatprep.subr.bf16.mxu1 %v841_v0 }
  0x24   :  { %705 = vmatpush3.bf16.msra.mxu0 %v774_v15 }
  0x25   :  { %687 = vmatpush3.bf16.msra.mxu1 %v767_v8  ;;  %706 = vmatprep.subr.bf16.mxu0 %v841_v0 }
  0x26   :  { %688 = vmatprep.subr.bf16.mxu1 %v841_v0 }
  0x28   :  { %707 = vmatpush3.bf16.msra.mxu0 %v775_v16 }
  0x29   :  { %689 = vmatpush3.bf16.msra.mxu1 %v768_v9  ;;  %708 = vmatprep.subr.bf16.mxu0 %v841_v0 }
  0x2a   :  { %690 = vmatprep.subr.bf16.mxu1 %v841_v0 }
  0x2c   :  { %709 = vmatpush3.bf16.msra.mxu0 %v776_v23 }
  0x2d   :  { %691 = vmatpush3.bf16.msra.mxu1 %v769_v10  ;;  %710 = vmatprep.subr.bf16.mxu0 %v841_v0 }
  0x2e   :  { %716 = vmatprep.subr.bf16.mxu1 %v841_v0 }
  0x30   :  { %711 = vmatpush3.bf16.msra.mxu0 %v777_v24 }
  0x31   :  { %736 = vmatprep.subr.bf16.mxu0 %v841_v0 }
  0xd2   :  { %v112_v18 = vpop.f32.mrf.mxu0 }
  0xd3   :  { %v113_v19 = vadd.f32 %v591_v17, %v112_v18 }
  0xd4   :  { %v675_v20 = vpop.f32.mrf.mxu0 }
  0xd5   :  { %v116_v21 = vmax.f32 %v113_v19, 0.0 }
  0xd7   :  { %v117_v22 = vpack.c.bf16 %v116_v21, %v116_v21 }
  0xd9   :  { %693 = vmatmul.mubr.bf16.vlgmr.msra.gmra.mxu1 %v117_v22 }
  0xda   :  { %732 = vmatprep.mubr.msk.bf16.mxu1 %vm842_vm0, %v841_v0  ;;  %717 = vmatpush3.bf16.msra.mxu1 %v778_v25 }
  0xdb   :  { %718 = vmatprep.subr.bf16.mxu1 %v841_v0 }
  0xde   :  { %719 = vmatpush3.bf16.msra.mxu1 %v779_v26 }
  0xdf   :  { %720 = vmatprep.subr.bf16.mxu1 %v841_v0 }
  0xe2   :  { %721 = vmatpush3.bf16.msra.mxu1 %v780_v27 }
  0xe3   :  { %722 = vmatprep.subr.bf16.mxu1 %v841_v0 }
  0xe6   :  { %723 = vmatpush3.bf16.msra.mxu1 %v781_v28 }
  0xe7   :  { %724 = vmatprep.subr.bf16.mxu1 %v841_v0 }
  0xea   :  { %725 = vmatpush3.bf16.msra.mxu1 %v782_v29 }
  0xeb   :  { %726 = vmatprep.subr.bf16.mxu1 %v841_v0 }
  0xee   :  { %727 = vmatpush3.bf16.msra.mxu1 %v783_v30 }
  0xef   :  { %728 = vmatprep.subr.bf16.mxu1 %v841_v0 }
  0xf2   :  { %729 = vmatpush3.bf16.msra.mxu1 %v784_v39 }
  0xf3   :  { %730 = vmatprep.subr.bf16.mxu1 %v841_v0 }
  0xf6   :  { %731 = vmatpush3.bf16.msra.mxu1 %v785_v40 }
 0x199   :  { %v224_v32 = vpop.f32.mrf.mxu1 }
 0x19a   :  { %v225_v33 = vadd.f32 %v594_v31, %v224_v32 }
 0x19b   :  { %v694_v34 = vpop.f32.mrf.mxu1 }
 0x19c   :  { %v230_v35 = vmax.f32 %v225_v33, 0.0 }
 0x19d   :  { %v227_v36 = vpop.f32.mrf.mxu1 }
 0x19e   :  { %v231_v37 = vpack.c.bf16 %v230_v35, %v230_v35 }
 0x19f   :  { %v695_v38 = vpop.f32.mrf.mxu1 }
 0x1a0   :  { %713 = vmatmul.mubr.bf16.vlgmr.msra.gmra.mxu0 %v231_v37 }
 0x1a1   :  { %752 = vmatprep.mubr.msk.bf16.mxu0 %vm842_vm0, %v841_v0  ;;  %737 = vmatpush3.bf16.msra.mxu0 %v786_v41 }
 0x1a2   :  { %738 = vmatprep.subr.bf16.mxu0 %v841_v0 }
 0x1a5   :  { %739 = vmatpush3.bf16.msra.mxu0 %v787_v42 }
 0x1a6   :  { %740 = vmatprep.subr.bf16.mxu0 %v841_v0 }
 0x1a9   :  { %741 = vmatpush3.bf16.msra.mxu0 %v788_v43 }
 0x1aa   :  { %742 = vmatprep.subr.bf16.mxu0 %v841_v0 }
 0x1ad   :  { %743 = vmatpush3.bf16.msra.mxu0 %v789_v44 }
 0x1ae   :  { %744 = vmatprep.subr.bf16.mxu0 %v841_v0 }
 0x1b1   :  { %745 = vmatpush3.bf16.msra.mxu0 %v790_v45 }
 0x1b2   :  { %746 = vmatprep.subr.bf16.mxu0 %v841_v0 }
 0x1b5   :  { %747 = vmatpush3.bf16.msra.mxu0 %v791_v46 }
 0x1b6   :  { %748 = vmatprep.subr.bf16.mxu0 %v841_v0 }
 0x1b9   :  { %749 = vmatpush3.bf16.msra.mxu0 %v792_v55 }
 0x1ba   :  { %750 = vmatprep.subr.bf16.mxu0 %v841_v0 }
 0x1bd   :  { %751 = vmatpush3.bf16.msra.mxu0 %v793_v56 }
 0x260   :  { %v339_v48 = vpop.f32.mrf.mxu0 }
 0x261   :  { %v340_v49 = vadd.f32 %v604_v47, %v339_v48 }
 0x262   :  { %v714_v50 = vpop.f32.mrf.mxu0 }
 0x263   :  { %v345_v51 = vmax.f32 %v340_v49, 0.0 }
 0x264   :  { %v342_v52 = vpop.f32.mrf.mxu0 }
 0x265   :  { %v346_v53 = vpack.c.bf16 %v345_v51, %v345_v51 }
 0x266   :  { %v715_v54 = vpop.f32.mrf.mxu0 }
 0x267   :  { %733 = vmatmul.mubr.bf16.vlgmr.msra.gmra.mxu1 %v346_v53 }
 0x327   :  { %v454_v58 = vpop.f32.mrf.mxu1 }
 0x328   :  { %v455_v59 = vadd.f32 %v614_v57, %v454_v58 }
 0x329   :  { %v734_v60 = vpop.f32.mrf.mxu1 }
 0x32a   :  { %v460_v61 = vmax.f32 %v455_v59, 0.0 }
 0x32b   :  { %v457_v62 = vpop.f32.mrf.mxu1 }
 0x32c   :  { %v461_v63 = vpack.c.bf16 %v460_v61, %v460_v61 }
 0x32d   :  { %v735_v1 = vpop.f32.mrf.mxu1 }
 0x32e   :  { %753 = vmatmul.mubr.bf16.vlgmr.msra.gmra.mxu0 %v461_v63 }
 0x3ee   :  { %v569_v0 = vpop.f32.mrf.mxu0 }
 0x3ef   :  { %v570_v3 = vadd.f32 %v624_v2, %v569_v0 }
 0x3f0   :  { %v754_v4 = vpop.f32.mrf.mxu0 }
 0x3f1   :  { %575 = vst.msk [vmem:[#allocation5] sm:$0xff] %vm42_vm1, %v570_v3 }
 0x3f2   :  { %v572_v5 = vpop.f32.mrf.mxu0 }
 0x3f3   :  { %825 = shalt.err (!%p822_p9)
}
 0x3f4   :  { %585 = dma.vmem_to_hbm [thread:$0]  %s583_s8, 128, %s945_s4, [#allocation4]   ;;  %v755_v6 = vpop.f32.mrf.mxu0 }
 0x3f5   :  { %836 = dma.done.wait [#allocation4], 128  }
 0x3f6   :  { %837 = vsyncadd [#allocation4], 4294967168 }
 0x3f7   :  { %589 = vsyncpa [#allocation3], 1 }
 0x3f8   :  { %590 = vsyncpa [#allocation4], 1 }

</bundles_post_ra>
